<compile_context>
chip_gen: v5e
topology: v5e:2x2
jax: 0.10.0
libtpu: 0.0.40
codegen_flags: <defaults>
</compile_context>

<pallas_src>
import functools

import jax
import jax.numpy as jnp
from jax.experimental import pallas as pl
from jax.experimental.pallas import tpu as pltpu


def _round_up(x, m):
    return ((x + m - 1) // m) * m


def _mlp_kernel(x_ref, w1_ref, b1_ref, w2_ref, b2_ref, w3_ref, b3_ref, o_ref):
    # Activations stream in as f32; cast to bf16 in-kernel (no extra wrapper
    # HBM pass). All accumulation / bias / ReLU stay in f32.
    x = x_ref[...].astype(jnp.bfloat16)                       # [TB, D]
    # fc1 + relu
    h1 = jnp.dot(x, w1_ref[...], preferred_element_type=jnp.float32) + b1_ref[...]
    h1 = jnp.maximum(h1, 0.0)
    # fc2 + relu
    h2 = jnp.dot(h1.astype(jnp.bfloat16), w2_ref[...],
                 preferred_element_type=jnp.float32) + b2_ref[...]
    h2 = jnp.maximum(h2, 0.0)
    # fc3 (q-values, no activation) -> narrow padded output [TB, AP]
    q = jnp.dot(h2.astype(jnp.bfloat16), w3_ref[...],
                preferred_element_type=jnp.float32) + b3_ref[...]
    o_ref[...] = q.astype(o_ref.dtype)


@functools.partial(jax.jit, static_argnames=("num_actions", "batch_tile"))
def net_forward(states, params, *, num_actions, batch_tile=4096):
    """Forward pass of Net as a single fused, batch-tiled Pallas kernel.

    states: [B, dem_states] float32
    params: packed params from `init_params`
    returns: q_values [B, num_actions] float32
    """
    w1, b1 = params["w1"], params["b1"]      # [D, 32]   bf16, [1, 32]  f32
    w2, b2 = params["w2"], params["b2"]      # [32, HP]  bf16, [1, HP]  f32
    w3, b3 = params["w3"], params["b3"]      # [HP, AP]  bf16, [1, AP]  f32

    B, D = states.shape
    H1 = w1.shape[1]
    HP = w2.shape[1]
    AP = w3.shape[1]                         # round_up(num_actions, 8)

    # Batch tile: multiple of 8 sublanes, as large as batch_tile, but capped so
    # the grid has >= 2 steps whenever there is enough work (lets the parallel
    # batch axis shard across both v7x TensorCores; negligible cost elsewhere).
    nb = _round_up(B, 8)
    TB = min(batch_tile, nb)
    if nb // TB < 2 and nb >= 16:
        TB = _round_up((nb + 1) // 2, 8)

    grid = (pl.cdiv(B, TB),)                 # ragged last tile handled by Pallas

    const = lambda arr: pl.BlockSpec(arr.shape, lambda i: (0, 0))

    cost = pl.CostEstimate(
        flops=2 * B * (D * H1 + H1 * HP + HP * AP),
        transcendentals=0,
        bytes_accessed=int(
            states.size * states.dtype.itemsize        # activation read
            + B * AP * 4                               # narrow q-value write
            + sum(a.size * a.dtype.itemsize for a in (w1, b1, w2, b2, w3, b3))
        ),
    )

    q = pl.pallas_call(
        _mlp_kernel,
        out_shape=jax.ShapeDtypeStruct((B, AP), jnp.float32),
        grid=grid,
        in_specs=[
            pl.BlockSpec((TB, D), lambda i: (i, 0)),   # streamed f32 activations
            const(w1), const(b1),                       # VMEM-resident weights
            const(w2), const(b2),
            const(w3), const(b3),
        ],
        # Output block last dim == full array dim (AP) -> legal and narrow.
        out_specs=pl.BlockSpec((TB, AP), lambda i: (i, 0)),
        compiler_params=pltpu.CompilerParams(
            dimension_semantics=("parallel",),          # megacore shard on v7x
        ),
        cost_estimate=cost,
    )(states, w1, b1, w2, b2, w3, b3)

    return q if AP == num_actions else q[:, :num_actions]


def init_params(key, dem_states, num_actions, hidden_layer_size=50):
    """PyTorch nn.Linear-style init (U[-1/sqrt(fan_in), 1/sqrt(fan_in)]).

    Returns two dicts:
      raw    — f32, unpadded, weights as [in, out]  (reference semantics)
      packed — bf16 weights / f32 biases; hidden padded to a multiple of 64 and
               actions padded to a multiple of 8 (zero padding), for the kernel.
    """
    def linear(key, fan_in, fan_out):
        kw, kb = jax.random.split(key)
        bound = 1.0 / jnp.sqrt(jnp.float32(fan_in))
        w = jax.random.uniform(kw, (fan_in, fan_out), jnp.float32, -bound, bound)
        b = jax.random.uniform(kb, (1, fan_out), jnp.float32, -bound, bound)
        return w, b

    k1, k2, k3 = jax.random.split(key, 3)
    w1, b1 = linear(k1, dem_states, 32)
    w2, b2 = linear(k2, 32, hidden_layer_size)
    w3, b3 = linear(k3, hidden_layer_size, num_actions)
    raw = {"w1": w1, "b1": b1, "w2": w2, "b2": b2, "w3": w3, "b3": b3}

    HP = _round_up(hidden_layer_size, 64)   # 50 -> 64 (VMEM-only intermediate)
    AP = _round_up(num_actions, 8)          # narrow writeback (4 -> 8)

    pad_w2 = jnp.pad(w2, ((0, 0), (0, HP - hidden_layer_size)))
    pad_b2 = jnp.pad(b2, ((0, 0), (0, HP - hidden_layer_size)))
    pad_w3 = jnp.pad(w3, ((0, HP - hidden_layer_size), (0, AP - num_actions)))
    pad_b3 = jnp.pad(b3, ((0, 0), (0, AP - num_actions)))

    # NOTE: weights could be kept f32 at essentially zero cost (kernel is
    # output-write/overhead bound); bf16 kept here for the MXU-native path.
    packed = {
        "w1": w1.astype(jnp.bfloat16), "b1": b1,
        "w2": pad_w2.astype(jnp.bfloat16), "b2": pad_b2,
        "w3": pad_w3.astype(jnp.bfloat16), "b3": pad_b3,
    }
    return raw, packed


def net_forward_ref_f32(states, raw):
    """Pure-JAX f32 reference (exact PyTorch semantics)."""
    h1 = jnp.maximum(states @ raw["w1"] + raw["b1"], 0.0)
    h2 = jnp.maximum(h1 @ raw["w2"] + raw["b2"], 0.0)
    return h2 @ raw["w3"] + raw["b3"]


def net_forward_ref_bf16(states, raw):
    """Pure-JAX reference with the same bf16-input / f32-accumulate dtypes as the kernel."""
    bf = jnp.bfloat16
    f32 = jnp.float32
    h1 = jnp.maximum(
        jnp.dot(states.astype(bf), raw["w1"].astype(bf), preferred_element_type=f32)
        + raw["b1"], 0.0)
    h2 = jnp.maximum(
        jnp.dot(h1.astype(bf), raw["w2"].astype(bf), preferred_element_type=f32)
        + raw["b2"], 0.0)
    return (jnp.dot(h2.astype(bf), raw["w3"].astype(bf), preferred_element_type=f32)
            + raw["b3"])


if __name__ == "__main__":
    key = jax.random.PRNGKey(0)
    k_params, k_states, k_states2 = jax.random.split(key, 3)

    dem_states = 8        # input state dimension
    num_actions = 4       # number of actions
    hidden = 50           # hidden_layer_size (PyTorch default)
    batch = 8             # small batch of states
    # TODO(synk): for the B≈8 RL use case the fixed pallas_call/dispatch cost
    # dominates; batch many env states per call or fuse this MLP into the
    # surrounding step program.

    raw, packed = init_params(k_params, dem_states, num_actions, hidden)
    states = jax.random.normal(k_states, (batch, dem_states), jnp.float32)

    q_values = net_forward(states, packed, num_actions=num_actions)
    q_values = jax.block_until_ready(q_values)
    assert q_values.shape == (batch, num_actions)

    # Tight check vs a reference using the same bf16/f32 mixed precision.
    q_bf16_ref = net_forward_ref_bf16(states, raw)
    assert jnp.allclose(q_values, q_bf16_ref, atol=2e-3, rtol=2e-3), \
        "mismatch vs bf16 reference"

    # Loose check vs full-f32 PyTorch-equivalent semantics (bf16 weight error).
    q_f32_ref = net_forward_ref_f32(states, raw)
    assert jnp.allclose(q_values, q_f32_ref, atol=1e-1, rtol=1e-1), \
        "mismatch vs f32 reference"

    # Second, slightly larger batch: exercises >=2 grid steps and a ragged
    # (partial) last tile to confirm masked writeback of padded rows.
    batch2 = 40
    states2 = jax.random.normal(k_states2, (batch2, dem_states), jnp.float32)
    q2 = jax.block_until_ready(net_forward(states2, packed, num_actions=num_actions))
    assert q2.shape == (batch2, num_actions)
    assert jnp.allclose(q2, net_forward_ref_bf16(states2, raw), atol=2e-3, rtol=2e-3), \
        "mismatch vs bf16 reference (ragged tile)"

    print("KERNEL_OK")
</pallas_src>

<mosaic_0001>
module attributes {stable_mosaic.version = 11 : i64} {
  func.func @_mlp_kernel(%arg0: i32, %arg1: memref<8x8xf32, #tpu.memory_space<vmem>>, %arg2: memref<8x32xbf16, #tpu.memory_space<vmem>>, %arg3: memref<1x32xf32, #tpu.memory_space<vmem>>, %arg4: memref<32x64xbf16, #tpu.memory_space<vmem>>, %arg5: memref<1x64xf32, #tpu.memory_space<vmem>>, %arg6: memref<64x8xbf16, #tpu.memory_space<vmem>>, %arg7: memref<1x8xf32, #tpu.memory_space<vmem>>, %arg8: memref<8x8xf32, #tpu.memory_space<vmem>>) attributes {dimension_semantics = [#tpu.dimension_semantics<parallel>], iteration_bounds = array<i64: 1>, scalar_prefetch = 0 : i64, scratch_operands = 0 : i64, tpu.core_type = #tpu.core_type<tc>, window_params = [{transform_indices = @transform_0, window_bounds = array<i64: 8, 8>}, {pipeline_mode = #tpu.pipeline_mode<synchronous>, transform_indices = @transform_1, window_bounds = array<i64: 8, 32>}, {pipeline_mode = #tpu.pipeline_mode<synchronous>, transform_indices = @transform_2, window_bounds = array<i64: 1, 32>}, {pipeline_mode = #tpu.pipeline_mode<synchronous>, transform_indices = @transform_3, window_bounds = array<i64: 32, 64>}, {pipeline_mode = #tpu.pipeline_mode<synchronous>, transform_indices = @transform_4, window_bounds = array<i64: 1, 64>}, {pipeline_mode = #tpu.pipeline_mode<synchronous>, transform_indices = @transform_5, window_bounds = array<i64: 64, 8>}, {pipeline_mode = #tpu.pipeline_mode<synchronous>, transform_indices = @transform_6, window_bounds = array<i64: 1, 8>}, {transform_indices = @transform_7, window_bounds = array<i64: 8, 8>}]} {
    %c0 = arith.constant 0 : index
    %c0_0 = arith.constant 0 : index
    %0 = vector.load %arg1[%c0, %c0_0] : memref<8x8xf32, #tpu.memory_space<vmem>>, vector<8x8xf32>
    %1 = arith.truncf %0 : vector<8x8xf32> to vector<8x8xbf16>
    %c0_1 = arith.constant 0 : index
    %c0_2 = arith.constant 0 : index
    %2 = vector.load %arg2[%c0_1, %c0_2] : memref<8x32xbf16, #tpu.memory_space<vmem>>, vector<8x32xbf16>
    %cst = arith.constant dense<0.000000e+00> : vector<8x32xf32>
    %3 = tpu.matmul %1, %2, %cst {dimension_numbers = #tpu.dot_dimension_numbers<[1], [0], [0], [1], [0, 0, 1, 1], [], []>} : vector<8x8xbf16>, vector<8x32xbf16>, vector<8x32xf32> -> vector<8x32xf32>
    %c0_3 = arith.constant 0 : index
    %c0_4 = arith.constant 0 : index
    %4 = vector.load %arg3[%c0_3, %c0_4] : memref<1x32xf32, #tpu.memory_space<vmem>>, vector<1x32xf32>
    %5 = vector.broadcast %4 : vector<1x32xf32> to vector<8x32xf32>
    %6 = arith.addf %3, %5 : vector<8x32xf32>
    %cst_5 = arith.constant 0.000000e+00 : f32
    %7 = vector.broadcast %cst_5 : f32 to vector<8x32xf32>
    %8 = arith.maximumf %6, %7 : vector<8x32xf32>
    %9 = arith.truncf %8 : vector<8x32xf32> to vector<8x32xbf16>
    %c0_6 = arith.constant 0 : index
    %c0_7 = arith.constant 0 : index
    %10 = vector.load %arg4[%c0_6, %c0_7] : memref<32x64xbf16, #tpu.memory_space<vmem>>, vector<32x64xbf16>
    %cst_8 = arith.constant dense<0.000000e+00> : vector<8x64xf32>
    %11 = tpu.matmul %9, %10, %cst_8 {dimension_numbers = #tpu.dot_dimension_numbers<[1], [0], [0], [1], [0, 0, 1, 1], [], []>} : vector<8x32xbf16>, vector<32x64xbf16>, vector<8x64xf32> -> vector<8x64xf32>
    %c0_9 = arith.constant 0 : index
    %c0_10 = arith.constant 0 : index
    %12 = vector.load %arg5[%c0_9, %c0_10] : memref<1x64xf32, #tpu.memory_space<vmem>>, vector<1x64xf32>
    %13 = vector.broadcast %12 : vector<1x64xf32> to vector<8x64xf32>
    %14 = arith.addf %11, %13 : vector<8x64xf32>
    %cst_11 = arith.constant 0.000000e+00 : f32
    %15 = vector.broadcast %cst_11 : f32 to vector<8x64xf32>
    %16 = arith.maximumf %14, %15 : vector<8x64xf32>
    %17 = arith.truncf %16 : vector<8x64xf32> to vector<8x64xbf16>
    %c0_12 = arith.constant 0 : index
    %c0_13 = arith.constant 0 : index
    %18 = vector.load %arg6[%c0_12, %c0_13] : memref<64x8xbf16, #tpu.memory_space<vmem>>, vector<64x8xbf16>
    %cst_14 = arith.constant dense<0.000000e+00> : vector<8x8xf32>
    %19 = tpu.matmul %17, %18, %cst_14 {dimension_numbers = #tpu.dot_dimension_numbers<[1], [0], [0], [1], [0, 0, 1, 1], [], []>} : vector<8x64xbf16>, vector<64x8xbf16>, vector<8x8xf32> -> vector<8x8xf32>
    %c0_15 = arith.constant 0 : index
    %c0_16 = arith.constant 0 : index
    %20 = vector.load %arg7[%c0_15, %c0_16] : memref<1x8xf32, #tpu.memory_space<vmem>>, vector<1x8xf32>
    %21 = vector.broadcast %20 : vector<1x8xf32> to vector<8x8xf32>
    %22 = arith.addf %19, %21 : vector<8x8xf32>
    %c0_17 = arith.constant 0 : index
    %c0_18 = arith.constant 0 : index
    %23 = vector.load %arg8[%c0_17, %c0_18] : memref<8x8xf32, #tpu.memory_space<vmem>>, vector<8x8xf32>
    tpu.vector_store %arg8[%c0_17, %c0_18], %22 {strides = array<i32>} : memref<8x8xf32, #tpu.memory_space<vmem>>, vector<8x8xf32>,
    return
  }
  func.func @transform_0(%arg0: i32) -> (i32, i32) {
    %c0_i32 = arith.constant 0 : i32
    %c0_i32_0 = arith.constant 0 : i32
    return %arg0, %c0_i32 : i32, i32
  }
  func.func @transform_1(%arg0: i32) -> (i32, i32) {
    %c0_i32 = arith.constant 0 : i32
    %c0_i32_0 = arith.constant 0 : i32
    %c0_i32_1 = arith.constant 0 : i32
    return %c0_i32, %c0_i32_0 : i32, i32
  }
  func.func @transform_2(%arg0: i32) -> (i32, i32) {
    %c0_i32 = arith.constant 0 : i32
    %c0_i32_0 = arith.constant 0 : i32
    %c0_i32_1 = arith.constant 0 : i32
    return %c0_i32, %c0_i32_0 : i32, i32
  }
  func.func @transform_3(%arg0: i32) -> (i32, i32) {
    %c0_i32 = arith.constant 0 : i32
    %c0_i32_0 = arith.constant 0 : i32
    %c0_i32_1 = arith.constant 0 : i32
    return %c0_i32, %c0_i32_0 : i32, i32
  }
  func.func @transform_4(%arg0: i32) -> (i32, i32) {
    %c0_i32 = arith.constant 0 : i32
    %c0_i32_0 = arith.constant 0 : i32
    %c0_i32_1 = arith.constant 0 : i32
    return %c0_i32, %c0_i32_0 : i32, i32
  }
  func.func @transform_5(%arg0: i32) -> (i32, i32) {
    %c0_i32 = arith.constant 0 : i32
    %c0_i32_0 = arith.constant 0 : i32
    %c0_i32_1 = arith.constant 0 : i32
    return %c0_i32, %c0_i32_0 : i32, i32
  }
  func.func @transform_6(%arg0: i32) -> (i32, i32) {
    %c0_i32 = arith.constant 0 : i32
    %c0_i32_0 = arith.constant 0 : i32
    %c0_i32_1 = arith.constant 0 : i32
    return %c0_i32, %c0_i32_0 : i32, i32
  }
  func.func @transform_7(%arg0: i32) -> (i32, i32) {
    %c0_i32 = arith.constant 0 : i32
    %c0_i32_0 = arith.constant 0 : i32
    return %arg0, %c0_i32 : i32, i32
  }
}

</mosaic_0001>

<bundles_post_ra>
// kernel: net_forward.1
= control target key start
LH: loop header
LB: loop body
LE: loop exit
PB: predicated region body
PF: predicated region fallthrough
CT: control target
= control target key end

     0   :  { %vm38_vm0 = vcmask 1043456   ;;  %vm34_vm1 = vcmask 64512   ;;  %vm77_vm2 = vcmask 261120   ;;  %vm132_vm3 = vcmask 523264   ;;  %s268_s1 = inlined_call_operand.vmem [shape: bf16[8,32], index: 1, kind: input, shape index: {}]   ;;  %s269_s0 = inlined_call_operand.vmem [shape: f32[8,8], index: 0, kind: input, shape index: {}]   ;;  %s270_s2 = inlined_call_operand.vmem [shape: f32[1,32], index: 2, kind: input, shape index: {}]   ;;  %s271_s4 = inlined_call_operand.vmem [shape: f32[1,64], index: 4, kind: input, shape index: {}]   ;;  %s272_s3 = inlined_call_operand.vmem [shape: bf16[32,64], index: 3, kind: input, shape index: {}]   ;;  %s273_s5 = inlined_call_operand.vmem [shape: bf16[64,8], index: 5, kind: input, shape index: {}]   ;;  %s274_s6 = inlined_call_operand.vmem [shape: f32[1,8], index: 6, kind: input, shape index: {}]   ;;  %s275_s7 = inlined_call_operand.vmem [shape: f32[8,8], index: 7, kind: output, shape index: {}]  }
   0x1   :  { %v29_v0 = vld [vmem:[%s268_s1] sm:$0xf]  ;;  %v182_v4 = vld [vmem:[%s272_s3 + $0x8] sm:$0xff]  ;;  %v186_v6 = vld [vmem:[%s273_s5 + $0x18] sm:$0xff] }
   0x2   :  { %v27_v1 = vld [vmem:[%s269_s0] sm:$0xff]  ;;  %v40_v2 = vsel %vm38_vm0, %v29_v0, 0  ;;  %87 = vmatpush.bf16.msra.mxu1 %v182_v4  ;;  %140 = vmatpush.bf16.msra.mxu2 %v186_v6  ;;  %v185_v7 = vld [vmem:[%s273_s5 + $0x10] sm:$0xff]  ;;  %v184_v14 = vld [vmem:[%s273_s5 + $0x8] sm:$0xff] }
   0x3   :  { %v28_v3 = vpack.c.bf16 %v27_v1, %v27_v1  ;;  %49 = vmatpush.bf16.msra.mxu0 %v40_v2  ;;  %v181_v5 = vld [vmem:[%s272_s3] sm:$0xff] }
   0x4   :  { %v187_v8 = vld [vmem:[%s270_s2] ss:$0 sm:$0xff] }
   0x5   :  { %v183_v15 = vld [vmem:[%s273_s5] sm:$0xff] }
   0x6   :  { %154 = vmatmul.msk.bf16.vlgmr.msra.gmra.mxu0 %vm34_vm1, %v28_v3  ;;  %88 = vmatpush.bf16.msra.mxu1 %v181_v5  ;;  %v188_v16 = vld [vmem:[%s271_s4] ss:$0 sm:$0xff] }
   0x7   :  { %141 = vmatpush.bf16.msra.mxu2 %v185_v7  ;;  %v189_v22 = vld [vmem:[%s274_s6] ss:$0 sm:$0xff] }
   0xb   :  { %142 = vmatpush.bf16.msra.mxu2 %v184_v14 }
   0xf   :  { %143 = vmatpush.bf16.msra.mxu2 %v183_v15 }
  0x83   :  { %v51_v9 = vpop.f32.mrf.mxu0 }
  0x84   :  { %v52_v10 = vadd.f32 %v187_v8, %v51_v9 }
  0x86   :  { %v55_v11 = vmax.f32 %v52_v10, 0.0 }
  0x88   :  { %v56_v12 = vpack.c.bf16 %v55_v11, %v55_v11 }
  0x8a   :  { %163 = vmatmul.msk.bf16.vlgmr.msra.gmra.mxu1 %vm77_vm2, %v56_v12 }
  0x8b   :  { %v53_v13 = vpop.f32.mrf.mxu0 }
 0x107   :  { %v90_v17 = vpop.f32.mrf.mxu1 }
 0x108   :  { %v91_v18 = vadd.f32 %v188_v16, %v90_v17 }
 0x10a   :  { %v94_v19 = vmax.f32 %v91_v18, 0.0 }
 0x10c   :  { %v95_v20 = vpack.c.bf16 %v94_v19, %v94_v19 }
 0x10e   :  { %180 = vmatmul.msk.bf16.vlgmr.msra.gmra.mxu2 %vm132_vm3, %v95_v20 }
 0x10f   :  { %v92_v21 = vpop.f32.mrf.mxu1 }
 0x191   :  { %v145_v23 = vpop.f32.mrf.mxu2 }
 0x192   :  { %v146_v24 = vadd.f32 %v189_v22, %v145_v23 }
 0x194   :  { %149 = vst.msk [vmem:[%s275_s7] sm:$0xff] %vm34_vm1, %v146_v24 }
 0x199   :  { %v147_v25 = vpop.f32.mrf.mxu2 }

</bundles_post_ra>
